<compile_context>
chip_gen: v7x
topology: tpu7x:2x2x1
jax: 0.10.0
libtpu: 0.0.40
codegen_flags: <defaults>
</compile_context>

<pallas_src>
import functools
from collections import namedtuple

import numpy as np

import jax
import jax.numpy as jnp
from jax.experimental import pallas as pl
from jax.experimental.pallas import tpu as pltpu


def _round_up(x, m):
    return ((x + m - 1) // m) * m


# ---------------------------------------------------------------------------
# Hardware introspection -> generation-aware VMEM budget / tile targets.
# ---------------------------------------------------------------------------
def _hw_params():
    vmem_cap = 64 << 20
    kind = ""
    try:
        vmem_cap = int(pltpu.get_tpu_info().vmem_capacity_bytes)
    except Exception:
        pass
    try:
        kind = jax.devices()[0].device_kind.lower()
    except Exception:
        pass
    small_vmem = vmem_cap <= (64 << 20)        # v7x-like: 64 MiB VMEM, 2 TCs
    dual_tc = small_vmem
    is_v5 = "v5" in kind
    vmem_budget = (44 << 20) if small_vmem else (100 << 20)
    tm_target = 512 if dual_tc else 1024
    tk_target = 256 if is_v5 else 512          # finer K blocks pay on v5e MXU
    return vmem_budget, dual_tc, tm_target, tk_target


# ---------------------------------------------------------------------------
# Kernels
# ---------------------------------------------------------------------------
def _dense_small_kernel(adj_ref, emb_ref, out_ref):
    out_ref[...] = jnp.dot(
        adj_ref[...], emb_ref[...], preferred_element_type=jnp.float32
    )


def _bsr_resident_kernel(nblk_ref, cols_ref, adj_ref, emb_ref, out_ref, *,
                         tk, max_blocks):
    """Block-sparse SpMM with the whole embedding matrix VMEM-resident."""
    i = pl.program_id(0)
    s = pl.program_id(1)

    @pl.when(s == 0)
    def _():
        out_ref[...] = jnp.zeros_like(out_ref)

    @pl.when(s < nblk_ref[i])
    def _():
        k0 = pl.multiple_of(cols_ref[i * max_blocks + s] * tk, tk)
        out_ref[...] += jnp.dot(
            adj_ref[...], emb_ref[pl.ds(k0, tk), :],
            preferred_element_type=jnp.float32,
        )


def _bsr_streamed_kernel(nblk_ref, cols_ref, adj_ref, emb_ref, out_ref):
    """Fallback: stream one (tk, Dp) embedding tile per nonzero block."""
    i = pl.program_id(0)
    s = pl.program_id(1)

    @pl.when(s == 0)
    def _():
        out_ref[...] = jnp.zeros_like(out_ref)

    @pl.when(s < nblk_ref[i])
    def _():
        out_ref[...] += jnp.dot(
            adj_ref[...], emb_ref[...], preferred_element_type=jnp.float32
        )


# ---------------------------------------------------------------------------
# Per-graph preparation (call once per static SimGCL graph, reuse per step).
# ---------------------------------------------------------------------------
PreparedGraph = namedtuple(
    "PreparedGraph",
    ["adj_bf16", "nblk", "cols", "max_blocks", "tm", "tk", "M", "K", "Mp", "Kp"],
)


def prepare_gcn_graph(adj, *, emb_dim=64, tm=None, tk=None):
    """Pad the adjacency to bf16 tiles on device and derive block-CSR metadata
    (per-row-tile nonzero K-block counts + block-column ids).  Only the tiny
    (n_m, n_k) block occupancy mask crosses the device/host boundary."""
    M, K = adj.shape
    vmem_budget, dual_tc, tm_target, tk_target = _hw_params()
    Dp = _round_up(max(emb_dim, 128), 128)
    tm = tm or tm_target
    tk = tk or tk_target

    m128 = _round_up(M, 128) // 128
    k128 = _round_up(K, 128) // 128
    tm = max(128, min(tm // 128, m128) * 128)
    if dual_tc and m128 >= 2:
        # Keep >= 2 row tiles so both TensorCores of a dual-TC chip get work.
        tm = min(tm, 128 * ((m128 + 1) // 2))
    tk = max(128, min(tk // 128, k128) * 128)

    # Shrink tiles until the worst-case (streamed) working set fits VMEM.
    def _est(tm_, tk_):
        return (2 * tm_ * tk_ * 2 + 2 * tk_ * Dp * 2 + 2 * tm_ * Dp * 4
                + (2 << 20))

    while _est(tm, tk) > vmem_budget and (tm > 128 or tk > 128):
        if tk >= tm and tk > 128:
            tk //= 2
        else:
            tm //= 2
        tm = max(128, (tm // 128) * 128)
        tk = max(128, (tk // 128) * 128)

    Mp, Kp = _round_up(M, tm), _round_up(K, tk)
    n_m, n_k = Mp // tm, Kp // tk

    adj_bf = (
        jnp.zeros((Mp, Kp), jnp.bfloat16).at[:M, :K].set(adj.astype(jnp.bfloat16))
    )
    blk_any = jnp.any(adj_bf.reshape(n_m, tm, n_k, tk) != 0, axis=(1, 3))
    blk_any = np.asarray(jax.device_get(blk_any))

    nblk = blk_any.sum(axis=1).astype(np.int32)
    max_blocks = max(1, int(nblk.max()))
    cols = np.zeros((n_m, max_blocks), np.int32)
    for i in range(n_m):
        idx = np.nonzero(blk_any[i])[0].astype(np.int32)
        if idx.size:
            cols[i, : idx.size] = idx
            cols[i, idx.size:] = idx[-1]   # padded slots point at a valid block

    return PreparedGraph(
        adj_bf16=adj_bf,
        nblk=jnp.asarray(nblk, jnp.int32),
        cols=jnp.asarray(cols.reshape(-1), jnp.int32),
        max_blocks=max_blocks,
        tm=tm, tk=tk, M=M, K=K, Mp=Mp, Kp=Kp,
    )


# ---------------------------------------------------------------------------
# Forward paths
# ---------------------------------------------------------------------------
def _gcn_small_dense(adj, embeds, vmem_budget):
    M, K = adj.shape
    _, D = embeds.shape
    Dp = _round_up(max(D, 128), 128)
    Mp, Kp = _round_up(M, 16), _round_up(K, 128)   # 16: bf16 sublane packing
    adj_p = jnp.zeros((Mp, Kp), jnp.bfloat16).at[:M, :K].set(
        adj.astype(jnp.bfloat16))
    emb_p = jnp.zeros((Kp, Dp), jnp.bfloat16).at[:K, :D].set(
        embeds.astype(jnp.bfloat16))
    est = 2 * (Mp * Kp * 2 + Kp * Dp * 2 + Mp * Dp * 4) + (2 << 20)
    out = pl.pallas_call(
        _dense_small_kernel,
        out_shape=jax.ShapeDtypeStruct((Mp, Dp), jnp.float32),
        grid=(1,),
        in_specs=[
            pl.BlockSpec((Mp, Kp), lambda i: (0, 0)),
            pl.BlockSpec((Kp, Dp), lambda i: (0, 0)),
        ],
        out_specs=pl.BlockSpec((Mp, Dp), lambda i: (0, 0)),
        compiler_params=pltpu.CompilerParams(
            vmem_limit_bytes=int(min(max(est, 4 << 20), vmem_budget))
        ),
    )(adj_p, emb_p)
    return out[:M, :D]


def _gcn_block_sparse(prep, embeds, force_streamed=False):
    K2, D = embeds.shape
    assert K2 == prep.K, "inner dims must match"
    Dp = _round_up(max(D, 128), 128)
    vmem_budget, _, _, _ = _hw_params()

    tm, tk = prep.tm, prep.tk
    Mp, Kp = prep.Mp, prep.Kp
    n_m = Mp // tm
    max_blocks = prep.max_blocks

    emb_p = jnp.zeros((Kp, Dp), jnp.bfloat16).at[:prep.K, :D].set(
        embeds.astype(jnp.bfloat16))

    # Resident emb (one (Kp, Dp) VMEM block, sliced in-kernel) vs streamed.
    est_resident = (2 * tm * tk * 2 + 2 * Kp * Dp * 2 + 2 * tm * Dp * 4
                    + (2 << 20))
    est_streamed = (2 * tm * tk * 2 + 2 * tk * Dp * 2 + 2 * tm * Dp * 4
                    + (2 << 20))
    resident = (not force_streamed) and est_resident <= vmem_budget
    est = est_resident if resident else est_streamed
    vmem_limit = int(min(max(est, 8 << 20), vmem_budget))

    def adj_map(i, s, nblk_ref, cols_ref):
        return (i, cols_ref[i * max_blocks + s])

    def out_map(i, s, nblk_ref, cols_ref):
        return (i, 0)

    if resident:
        kernel = functools.partial(
            _bsr_resident_kernel, tk=tk, max_blocks=max_blocks)
        emb_spec = pl.BlockSpec((Kp, Dp), lambda i, s, nblk_ref, cols_ref: (0, 0))
    else:
        kernel = _bsr_streamed_kernel

        def emb_map(i, s, nblk_ref, cols_ref):
            return (cols_ref[i * max_blocks + s], 0)

        emb_spec = pl.BlockSpec((tk, Dp), emb_map)

    out = pl.pallas_call(
        kernel,
        out_shape=jax.ShapeDtypeStruct((Mp, Dp), jnp.float32),
        grid_spec=pltpu.PrefetchScalarGridSpec(
            num_scalar_prefetch=2,
            grid=(n_m, max_blocks),
            in_specs=[pl.BlockSpec((tm, tk), adj_map), emb_spec],
            out_specs=pl.BlockSpec((tm, Dp), out_map),
        ),
        compiler_params=pltpu.CompilerParams(
            dimension_semantics=("parallel", "arbitrary"),
            vmem_limit_bytes=vmem_limit,
        ),
    )(prep.nblk, prep.cols, prep.adj_bf16, emb_p)

    return out[:prep.M, :D]


def gcn_layer(adj, embeds, *, prepared=None, tm=None, tk=None,
              _force_streamed=False):
    """out = adj @ embeds (dense equivalent of torch.spmm). f32 output.
    Pass `prepared=prepare_gcn_graph(adj, ...)` to reuse per-graph metadata
    across forward calls (SimGCL graphs are static)."""
    M, K = adj.shape
    K2, D = embeds.shape
    assert K == K2, "inner dims must match"
    Dp = _round_up(max(D, 128), 128)
    # TODO(synk): D handled as a single lane-dense tile; very large D would
    #             need an extra output-column grid axis.
    assert Dp <= 4096, "embedding dim too large for single-D-tile kernel"

    vmem_budget, _, _, _ = _hw_params()
    if prepared is None and M * K <= 512 * 512 and K * Dp * 2 <= (4 << 20):
        return _gcn_small_dense(adj, embeds, vmem_budget)
    if prepared is None:
        prepared = prepare_gcn_graph(adj, emb_dim=D, tm=tm, tk=tk)
    return _gcn_block_sparse(prepared, embeds, force_streamed=_force_streamed)


# ---------------------------------------------------------------------------
# Self-test
# ---------------------------------------------------------------------------
if __name__ == "__main__":
    key = jax.random.PRNGKey(0)
    k_adj1, k_emb1, k_adj2, k_emb2 = jax.random.split(key, 4)

    def build_adj(k, N, band=None):
        raw = jax.random.uniform(k, (N, N), dtype=jnp.float32)
        mask = (raw > 0.95).astype(jnp.float32)  # ~5% density
        if band is not None:
            ii = jnp.arange(N)
            band_mask = (jnp.abs(ii[:, None] - ii[None, :]) < band).astype(
                jnp.float32)
            mask = mask * band_mask
        adj_un = jnp.minimum(mask + mask.T + jnp.eye(N, dtype=jnp.float32), 1.0)
        deg = jnp.sum(adj_un, axis=1)
        d_inv_sqrt = 1.0 / jnp.sqrt(jnp.maximum(deg, 1.0))
        return adj_un * d_inv_sqrt[:, None] * d_inv_sqrt[None, :]

    ok = True

    # Case 1: small graph, non-aligned shapes -> single-invocation dense path.
    N1, D1 = 200, 96
    adj1 = build_adj(k_adj1, N1)
    emb1 = jax.random.normal(k_emb1, (N1, D1), dtype=jnp.float32)
    out1 = jax.block_until_ready(gcn_layer(adj1, emb1))
    ref1 = adj1 @ emb1                       # true f32 torch.spmm semantics
    ok &= out1.shape == (N1, D1)
    ok &= bool(jnp.allclose(out1, ref1, atol=5e-2, rtol=5e-2))

    # Case 2: banded graph, non-tile-aligned N -> block-sparse scalar-prefetch
    # path with VMEM-resident embeddings.  Metadata prepared once, reused.
    N2, D2 = 1000, 128
    adj2 = build_adj(k_adj2, N2, band=192)
    emb2 = jax.random.normal(k_emb2, (N2, D2), dtype=jnp.float32)
    prep2 = prepare_gcn_graph(adj2, emb_dim=D2, tm=256, tk=256)
    ref2 = adj2 @ emb2

    out2 = jax.block_until_ready(gcn_layer(adj2, emb2, prepared=prep2))
    ok &= out2.shape == (N2, D2)
    ok &= bool(jnp.allclose(out2, ref2, atol=5e-2, rtol=5e-2))

    # Reuse the prepared graph for a second forward (no host round trip).
    out2b = jax.block_until_ready(gcn_layer(adj2, 0.5 * emb2, prepared=prep2))
    ok &= bool(jnp.allclose(out2b, 0.5 * ref2, atol=5e-2, rtol=5e-2))

    # Exercise the streamed-emb fallback path as well.
    out2c = jax.block_until_ready(
        gcn_layer(adj2, emb2, prepared=prep2, _force_streamed=True))
    ok &= bool(jnp.allclose(out2c, ref2, atol=5e-2, rtol=5e-2))

    assert ok
    print("KERNEL_OK")
</pallas_src>

<mosaic_0001>
module attributes {stable_mosaic.version = 11 : i64} {
  func.func @_dense_small_kernel(%arg0: i32, %arg1: memref<208x256xbf16, #tpu.memory_space<vmem>>, %arg2: memref<256x128xbf16, #tpu.memory_space<vmem>>, %arg3: memref<208x128xf32, #tpu.memory_space<vmem>>) attributes {dimension_semantics = [#tpu.dimension_semantics<arbitrary>], iteration_bounds = array<i64: 1>, scalar_prefetch = 0 : i64, scratch_operands = 0 : i64, tpu.core_type = #tpu.core_type<tc>, window_params = [{pipeline_mode = #tpu.pipeline_mode<synchronous>, transform_indices = @transform_0, window_bounds = array<i64: 208, 256>}, {pipeline_mode = #tpu.pipeline_mode<synchronous>, transform_indices = @transform_1, window_bounds = array<i64: 256, 128>}, {pipeline_mode = #tpu.pipeline_mode<synchronous>, transform_indices = @transform_2, window_bounds = array<i64: 208, 128>}]} {
    %c0 = arith.constant 0 : index
    %c0_0 = arith.constant 0 : index
    %0 = vector.load %arg1[%c0, %c0_0] : memref<208x256xbf16, #tpu.memory_space<vmem>>, vector<208x256xbf16>
    %c0_1 = arith.constant 0 : index
    %c0_2 = arith.constant 0 : index
    %1 = vector.load %arg2[%c0_1, %c0_2] : memref<256x128xbf16, #tpu.memory_space<vmem>>, vector<256x128xbf16>
    %cst = arith.constant dense<0.000000e+00> : vector<208x128xf32>
    %2 = tpu.matmul %0, %1, %cst {dimension_numbers = #tpu.dot_dimension_numbers<[1], [0], [0], [1], [0, 0, 1, 1], [], []>} : vector<208x256xbf16>, vector<256x128xbf16>, vector<208x128xf32> -> vector<208x128xf32>
    %c0_3 = arith.constant 0 : index
    %c0_4 = arith.constant 0 : index
    %3 = vector.load %arg3[%c0_3, %c0_4] : memref<208x128xf32, #tpu.memory_space<vmem>>, vector<208x128xf32>
    tpu.vector_store %arg3[%c0_3, %c0_4], %2 {strides = array<i32>} : memref<208x128xf32, #tpu.memory_space<vmem>>, vector<208x128xf32>,
    return
  }
  func.func @transform_0(%arg0: i32) -> (i32, i32) {
    %c0_i32 = arith.constant 0 : i32
    %c0_i32_0 = arith.constant 0 : i32
    %c0_i32_1 = arith.constant 0 : i32
    return %c0_i32, %c0_i32_0 : i32, i32
  }
  func.func @transform_1(%arg0: i32) -> (i32, i32) {
    %c0_i32 = arith.constant 0 : i32
    %c0_i32_0 = arith.constant 0 : i32
    %c0_i32_1 = arith.constant 0 : i32
    return %c0_i32, %c0_i32_0 : i32, i32
  }
  func.func @transform_2(%arg0: i32) -> (i32, i32) {
    %c0_i32 = arith.constant 0 : i32
    %c0_i32_0 = arith.constant 0 : i32
    %c0_i32_1 = arith.constant 0 : i32
    return %c0_i32, %c0_i32_0 : i32, i32
  }
}

</mosaic_0001>

<bundles_post_ra>
// kernel: tpu_custom_call.1
= control target key start
LH: loop header
LB: loop body
LE: loop exit
PB: predicated region body
PF: predicated region fallthrough
CT: control target
= control target key end

     0   :  { %7 = vsyncpa [#allocation3], 0  ;;  %s856_s0 = inlined_call_operand.hbm [shape: bf16[208,256], index: 0, kind: input, shape index: {}]   ;;  %s857_s1 = inlined_call_operand.hbm [shape: bf16[256,128], index: 1, kind: input, shape index: {}]   ;;  %s858_s2 = inlined_call_operand.hbm [shape: f32[208,128], index: 2, kind: output, shape index: {}]  }
   0x1   :  { %8 = vsyncpa [#allocation6], 0 }
   0x2   :  { %9 = vsyncpa [#allocation4], 0  ;;  %s792_s9 = smov [#allocation2]   ;;  %s720_s13 = scalar_lea.hbm %s856_s0, 3328 }
   0x3   :  { %s15_s10 = sshll.u32 %s792_s9, 4  ;;  %p721_p0 = scmp.ne.s32.totalorder %s856_s0, %s720_s13  ;;  %s16_s10 = int_to_ptr.vmem [resolvable:$true] %s15_s10 }
   0x4   :  { %p724_p1 = scmp.lt.u32.totalorder %s720_s13, %s856_s0 }
   0x6   :  { %p726_p2 = pnand %p724_p1, %p721_p0 }
   0x8   :  { %729 = shalt.err (!%p726_p2)
}
   0x9   :  { %s730_s18 = scalar_lea.vmem %s16_s10, 3328  ;;  %p735_p4 = scmp.lt.s32.totalorder %s16_s10, %s16_s10 }
   0xa   :  { %p731_p3 = scmp.ne.s32.totalorder %s16_s10, %s730_s18  ;;  %p736_p5 = scmp.lt.s32.totalorder %s730_s18, %s730_s18 }
   0xc   :  { %p737_p6 = por %p736_p5, %p735_p4 }
   0xe   :  { %p738_p7 = pnand %p737_p6, %p731_p3 }
  0x10   :  { %741 = shalt.err (!%p738_p7)
}
  0x11   :  { %s793_s19 = smov 128   ;;  %s794_s20 = smov 8  }
  0x12   :  { %21 = dma.hbm_to_vmem [thread:$0]  %s856_s0, 3328, %s16_s10, [#allocation3], %s793_s19, %s793_s19, %s794_s20  }
  0x13   :  { %s795_s23 = smov [#allocation5]   ;;  %s742_s27 = scalar_lea.hbm %s857_s1, 2048 }
  0x14   :  { %s27_s24 = sshll.u32 %s795_s23, 4  ;;  %p743_p8 = scmp.ne.s32.totalorder %s857_s1, %s742_s27  ;;  %s28_s24 = int_to_ptr.vmem [resolvable:$true] %s27_s24 }
  0x15   :  { %p746_p9 = scmp.lt.u32.totalorder %s742_s27, %s857_s1 }
  0x17   :  { %p748_p10 = pnand %p746_p9, %p743_p8 }
  0x19   :  { %751 = shalt.err (!%p748_p10)
}
  0x1a   :  { %s752_s4 = scalar_lea.vmem %s28_s24, 2048  ;;  %p757_p12 = scmp.lt.s32.totalorder %s28_s24, %s28_s24 }
  0x1b   :  { %p753_p11 = scmp.ne.s32.totalorder %s28_s24, %s752_s4  ;;  %p758_p13 = scmp.lt.s32.totalorder %s752_s4, %s752_s4 }
  0x1d   :  { %p759_p0 = por %p758_p13, %p757_p12 }
  0x1f   :  { %p760_p1 = pnand %p759_p0, %p753_p11 }
  0x21   :  { %763 = shalt.err (!%p760_p1)
}
  0x22   :  { %s796_s0 = smov 64   ;;  %s797_s5 = smov 4  }
  0x23   :  { %33 = dma.hbm_to_vmem [thread:$0]  %s857_s1, 2048, %s28_s24, [#allocation6], %s796_s0, %s796_s0, %s797_s5  }
  0x24   :  { %786 = dma.done.wait [#allocation3], 3328  }
  0x25   :  { %787 = vsyncadd [#allocation3], 4294963968 }
  0x26   :  { %788 = dma.done.wait [#allocation6], 2048  }
  0x27   :  { %789 = vsyncadd [#allocation6], 4294965248  ;;  %v665_v0 = vld [vmem:[#allocation5 + $0x40] sm:$0xff]   ;;  %v667_v2 = vld [vmem:[#allocation5 + $0x48] sm:$0xff]   ;;  %s798_s1 = smov [#allocation7]  }
  0x28   :  { %v666_v1 = vld [vmem:[#allocation5] sm:$0xff]   ;;  %548 = vmatprep.subr.bf16.mxu0 %v665_v0  ;;  %642 = vmatprep.subr.bf16.mxu1 %v665_v0  ;;  %v668_v3 = vld [vmem:[#allocation5 + $0x8] sm:$0xff]   ;;  %v669_v4 = vld [vmem:[#allocation5 + $0x50] sm:$0xff]   ;;  %s493_s8 = sshll.u32 %s798_s1, 4  ;;  %s494_s8 = int_to_ptr.vmem [resolvable:$true] %s493_s8 }
  0x29   :  { %549 = vmatpush3.bf16.msra.mxu0 %v666_v1  ;;  %650 = vmatpush3.bf16.msra.mxu1 %v666_v1  ;;  %v670_v5 = vld [vmem:[#allocation5 + $0x10] sm:$0xff]   ;;  %v671_v6 = vld [vmem:[#allocation5 + $0x58] sm:$0xff]   ;;  %v673_v8 = vld [vmem:[#allocation5 + $0x60] sm:$0xff]   ;;  %s764_s9 = scalar_lea.vmem %s494_s8, 3328  ;;  %p769_p3 = scmp.lt.s32.totalorder %s494_s8, %s494_s8 }
  0x2a   :  { %550 = vmatprep.subr.bf16.mxu0 %v667_v2  ;;  %643 = vmatprep.subr.bf16.mxu1 %v667_v2  ;;  %v672_v7 = vld [vmem:[#allocation5 + $0x18] sm:$0xff]   ;;  %v674_v9 = vld [vmem:[#allocation5 + $0x20] sm:$0xff]   ;;  %v675_v10 = vld [vmem:[#allocation5 + $0x68] sm:$0xff]   ;;  %p765_p2 = scmp.ne.s32.totalorder %s494_s8, %s764_s9  ;;  %p770_p4 = scmp.lt.s32.totalorder %s764_s9, %s764_s9 }
  0x2b   :  { %v683_v11 = vld [vmem:[#allocation2 + $0x4] ss:$8 sps:$4 sm:$0xff]   ;;  %v686_v12 = vld [vmem:[#allocation2 + $0x74] ss:$8 sps:$4 sm:$0xff]   ;;  %v681_v18 = vld [vmem:[#allocation2] ss:$8 sps:$4 sm:$0xff]  }
  0x2c   :  { %v676_v13 = vld [vmem:[#allocation5 + $0x28] sm:$0xff]   ;;  %v677_v14 = vld [vmem:[#allocation5 + $0x70] sm:$0xff]   ;;  %357 = vmatprep.mubr.bf16.mxu0 %v683_v11  ;;  %413 = vmatprep.mubr.bf16.mxu1 %v686_v12  ;;  %v679_v16 = vld [vmem:[#allocation5 + $0x78] sm:$0xff]   ;;  %p771_p5 = por %p770_p4, %p769_p3 }
  0x2d   :  { %551 = vmatpush3.bf16.msra.mxu0 %v668_v3  ;;  %651 = vmatpush3.bf16.msra.mxu1 %v668_v3  ;;  %v678_v15 = vld [vmem:[#allocation5 + $0x30] sm:$0xff]   ;;  %v680_v17 = vld [vmem:[#allocation5 + $0x38] sm:$0xff]   ;;  %v684_v19 = vld [vmem:[#allocation2 + $0x70] ss:$8 sps:$4 sm:$0xff]  }
  0x2e   :  { %552 = vmatprep.subr.bf16.mxu0 %v669_v4  ;;  %644 = vmatprep.subr.bf16.mxu1 %v669_v4  ;;  %v687_v20 = vld [vmem:[#allocation2 + $0x14] ss:$8 sps:$4 sm:$0xff]   ;;  %v690_v21 = vld [vmem:[#allocation2 + $0x84] ss:$8 sps:$4 sm:$0xff]   ;;  %v689_v22 = vld [vmem:[#allocation2 + $0x10] ss:$8 sps:$4 sm:$0xff]   ;;  %p772_p6 = pnand %p771_p5, %p765_p2 }
  0x2f   :  { %v692_v23 = vld [vmem:[#allocation2 + $0x80] ss:$8 sps:$4 sm:$0xff]   ;;  %v693_v24 = vld [vmem:[#allocation2 + $0x24] ss:$8 sps:$4 sm:$0xff]   ;;  %v696_v25 = vld [vmem:[#allocation2 + $0x94] ss:$8 sps:$4 sm:$0xff]  }
  0x30   :  { %v695_v26 = vld [vmem:[#allocation2 + $0x20] ss:$8 sps:$4 sm:$0xff]   ;;  %v698_v27 = vld [vmem:[#allocation2 + $0x90] ss:$8 sps:$4 sm:$0xff]   ;;  %v699_v28 = vld [vmem:[#allocation2 + $0x34] ss:$8 sps:$4 sm:$0xff]  }
  0x31   :  { %553 = vmatpush3.bf16.msra.mxu0 %v670_v5  ;;  %652 = vmatpush3.bf16.msra.mxu1 %v670_v5  ;;  %v702_v29 = vld [vmem:[#allocation2 + $0xa4] ss:$8 sps:$4 sm:$0xff]   ;;  %v701_v30 = vld [vmem:[#allocation2 + $0x30] ss:$8 sps:$4 sm:$0xff]   ;;  %v704_v31 = vld [vmem:[#allocation2 + $0xa0] ss:$8 sps:$4 sm:$0xff]  }
  0x32   :  { %554 = vmatprep.subr.bf16.mxu0 %v671_v6  ;;  %645 = vmatprep.subr.bf16.mxu1 %v671_v6  ;;  %v705_v32 = vld [vmem:[#allocation2 + $0x44] ss:$8 sps:$4 sm:$0xff]   ;;  %v708_v33 = vld [vmem:[#allocation2 + $0xb4] ss:$8 sps:$4 sm:$0xff]   ;;  %v707_v34 = vld [vmem:[#allocation2 + $0x40] ss:$8 sps:$4 sm:$0xff]  }
  0x33   :  { %v710_v35 = vld [vmem:[#allocation2 + $0xb0] ss:$8 sps:$4 sm:$0xff]   ;;  %v711_v36 = vld [vmem:[#allocation2 + $0x54] ss:$8 sps:$4 sm:$0xff]   ;;  %v714_v37 = vld [vmem:[#allocation2 + $0xc4] ss:$8 sps:$4 sm:$0xff]  }
  0x34   :  { %v713_v38 = vld [vmem:[#allocation2 + $0x50] ss:$8 sps:$4 sm:$0xff]   ;;  %v716_v39 = vld [vmem:[#allocation2 + $0xc0] ss:$8 sps:$4 sm:$0xff]   ;;  %v717_v40 = vld [vmem:[#allocation2 + $0x64] ss:$8 sps:$4 sm:$0xff]  }
  0x35   :  { %555 = vmatpush3.bf16.msra.mxu0 %v672_v7  ;;  %653 = vmatpush3.bf16.msra.mxu1 %v672_v7  ;;  %v719_v41 = vld [vmem:[#allocation2 + $0x60] ss:$8 sps:$4 sm:$0xff]  }
  0x36   :  { %556 = vmatprep.subr.bf16.mxu0 %v673_v8  ;;  %646 = vmatprep.subr.bf16.mxu1 %v673_v8 }
  0x39   :  { %557 = vmatpush3.bf16.msra.mxu0 %v674_v9  ;;  %654 = vmatpush3.bf16.msra.mxu1 %v674_v9 }
  0x3a   :  { %558 = vmatprep.subr.bf16.mxu0 %v675_v10  ;;  %647 = vmatprep.subr.bf16.mxu1 %v675_v10 }
  0x3d   :  { %559 = vmatpush3.bf16.msra.mxu0 %v676_v13  ;;  %655 = vmatpush3.bf16.msra.mxu1 %v676_v13 }
  0x3e   :  { %560 = vmatprep.subr.bf16.mxu0 %v677_v14  ;;  %648 = vmatprep.subr.bf16.mxu1 %v677_v14 }
  0x41   :  { %561 = vmatpush3.bf16.msra.mxu0 %v678_v15  ;;  %656 = vmatpush3.bf16.msra.mxu1 %v678_v15 }
  0x42   :  { %562 = vmatprep.subr.bf16.mxu0 %v679_v16  ;;  %649 = vmatprep.subr.bf16.mxu1 %v679_v16 }
  0x45   :  { %563 = vmatpush3.bf16.msra.mxu0 %v680_v17  ;;  %657 = vmatpush3.bf16.msra.mxu1 %v680_v17 }
  0x48   :  { %358 = vmatmul.mubr.bf16.vlgmr.msra.gmra.mrb[0].mxu0 %v681_v18  ;;  %414 = vmatmul.mubr.bf16.vlgmr.msra.gmra.mrb[0].mxu1 %v684_v19 }
  0x49   :  { %365 = vmatprep.mubr.bf16.mxu0 %v687_v20  ;;  %421 = vmatprep.mubr.bf16.mxu1 %v690_v21 }
  0x50   :  { %366 = vmatmul.mubr.bf16.gmra.mrb[4].mxu0 %v689_v22  ;;  %422 = vmatmul.mubr.bf16.gmra.mrb[4].mxu1 %v692_v23 }
  0x51   :  { %373 = vmatprep.mubr.bf16.mxu0 %v693_v24  ;;  %429 = vmatprep.mubr.bf16.mxu1 %v696_v25 }
  0x58   :  { %374 = vmatmul.mubr.bf16.gmra.mrb[8].mxu0 %v695_v26  ;;  %430 = vmatmul.mubr.bf16.gmra.mrb[8].mxu1 %v698_v27 }
  0x59   :  { %381 = vmatprep.mubr.bf16.mxu0 %v699_v28  ;;  %437 = vmatprep.mubr.bf16.mxu1 %v702_v29 }
  0x60   :  { %382 = vmatmul.mubr.bf16.gmra.mrb[12].mxu0 %v701_v30  ;;  %438 = vmatmul.mubr.bf16.gmra.mrb[12].mxu1 %v704_v31 }
  0x61   :  { %389 = vmatprep.mubr.bf16.mxu0 %v705_v32  ;;  %445 = vmatprep.mubr.bf16.mxu1 %v708_v33 }
  0x68   :  { %390 = vmatmul.mubr.bf16.gmra.mrb[16].mxu0 %v707_v34  ;;  %446 = vmatmul.mubr.bf16.gmra.mrb[16].mxu1 %v710_v35 }
  0x69   :  { %397 = vmatprep.mubr.bf16.mxu0 %v711_v36  ;;  %453 = vmatprep.mubr.bf16.mxu1 %v714_v37 }
  0x70   :  { %398 = vmatmul.mubr.bf16.gmra.mrb[20].mxu0 %v713_v38  ;;  %454 = vmatmul.mubr.bf16.gmra.mrb[20].mxu1 %v716_v39 }
  0x71   :  { %405 = vmatprep.mubr.bf16.mxu0 %v717_v40 }
  0x78   :  { %406 = vmatmul.mubr.bf16.gmra.mrb[24].mxu0 %v719_v41 }
 0x11b   :  { %v564_v42 = vpop.f32.mrb[0].mxu0  ;;  %v606_v43 = vpop.f32.mrb[0].mxu1 }
 0x11c   :  { %v565_v44 = vpop.f32.mrb[1].mxu0  ;;  %v607_v45 = vpop.f32.mrb[1].mxu1 }
 0x11d   :  { %v566_v46 = vadd.f32 %v565_v44, %v564_v42  ;;  %v567_v47 = vpop.f32.mrb[2].mxu0  ;;  %v608_v48 = vadd.f32 %v607_v45, %v606_v43  ;;  %v609_v49 = vpop.f32.mrb[2].mxu1 }
 0x11e   :  { %v568_v50 = vpop.f32.mrb[3].mxu0  ;;  %v610_v51 = vpop.f32.mrb[3].mxu1 }
 0x11f   :  { %462 = vst [vmem:[#allocation7] sm:$0xff] %v566_v46  ;;  %v569_v52 = vadd.f32 %v568_v50, %v567_v47  ;;  %476 = vst [vmem:[#allocation7 + $0x70] sm:$0xff] %v608_v48  ;;  %v611_v53 = vadd.f32 %v610_v51, %v609_v49 }
 0x121   :  { %463 = vst [vmem:[#allocation7 + $0x8] sm:$0xff] %v569_v52  ;;  %477 = vst [vmem:[#allocation7 + $0x78] sm:$0xff] %v611_v53 }
 0x123   :  { %v570_v54 = vpop.f32.mrb[4].mxu0  ;;  %v612_v55 = vpop.f32.mrb[4].mxu1 }
 0x124   :  { %v571_v56 = vpop.f32.mrb[5].mxu0  ;;  %v613_v57 = vpop.f32.mrb[5].mxu1 }
 0x125   :  { %v572_v58 = vadd.f32 %v571_v56, %v570_v54  ;;  %v573_v59 = vpop.f32.mrb[6].mxu0  ;;  %v614_v60 = vadd.f32 %v613_v57, %v612_v55  ;;  %v615_v61 = vpop.f32.mrb[6].mxu1 }
 0x126   :  { %v574_v62 = vpop.f32.mrb[7].mxu0  ;;  %v616_v63 = vpop.f32.mrb[7].mxu1 }
 0x127   :  { %464 = vst [vmem:[#allocation7 + $0x10] sm:$0xff] %v572_v58  ;;  %v575_v0 = vadd.f32 %v574_v62, %v573_v59  ;;  %478 = vst [vmem:[#allocation7 + $0x80] sm:$0xff] %v614_v60  ;;  %v617_v1 = vadd.f32 %v616_v63, %v615_v61 }
 0x129   :  { %465 = vst [vmem:[#allocation7 + $0x18] sm:$0xff] %v575_v0  ;;  %479 = vst [vmem:[#allocation7 + $0x88] sm:$0xff] %v617_v1 }
 0x12b   :  { %v576_v2 = vpop.f32.mrb[8].mxu0  ;;  %v618_v3 = vpop.f32.mrb[8].mxu1 }
 0x12c   :  { %v577_v4 = vpop.f32.mrb[9].mxu0  ;;  %v619_v5 = vpop.f32.mrb[9].mxu1 }
 0x12d   :  { %v578_v6 = vadd.f32 %v577_v4, %v576_v2  ;;  %v579_v7 = vpop.f32.mrb[10].mxu0  ;;  %v620_v8 = vadd.f32 %v619_v5, %v618_v3  ;;  %v621_v9 = vpop.f32.mrb[10].mxu1 }
 0x12e   :  { %v580_v10 = vpop.f32.mrb[11].mxu0  ;;  %v622_v11 = vpop.f32.mrb[11].mxu1 }
 0x12f   :  { %466 = vst [vmem:[#allocation7 + $0x20] sm:$0xff] %v578_v6  ;;  %v581_v12 = vadd.f32 %v580_v10, %v579_v7  ;;  %480 = vst [vmem:[#allocation7 + $0x90] sm:$0xff] %v620_v8  ;;  %v623_v13 = vadd.f32 %v622_v11, %v621_v9 }
 0x131   :  { %467 = vst [vmem:[#allocation7 + $0x28] sm:$0xff] %v581_v12  ;;  %481 = vst [vmem:[#allocation7 + $0x98] sm:$0xff] %v623_v13 }
 0x133   :  { %v582_v14 = vpop.f32.mrb[12].mxu0  ;;  %v624_v15 = vpop.f32.mrb[12].mxu1 }
 0x134   :  { %v583_v16 = vpop.f32.mrb[13].mxu0  ;;  %v625_v17 = vpop.f32.mrb[13].mxu1 }
 0x135   :  { %v584_v18 = vadd.f32 %v583_v16, %v582_v14  ;;  %v585_v19 = vpop.f32.mrb[14].mxu0  ;;  %v626_v20 = vadd.f32 %v625_v17, %v624_v15  ;;  %v627_v21 = vpop.f32.mrb[14].mxu1 }
 0x136   :  { %v586_v22 = vpop.f32.mrb[15].mxu0  ;;  %v628_v23 = vpop.f32.mrb[15].mxu1 }
 0x137   :  { %468 = vst [vmem:[#allocation7 + $0x30] sm:$0xff] %v584_v18  ;;  %v587_v24 = vadd.f32 %v586_v22, %v585_v19  ;;  %482 = vst [vmem:[#allocation7 + $0xa0] sm:$0xff] %v626_v20  ;;  %v629_v25 = vadd.f32 %v628_v23, %v627_v21 }
 0x139   :  { %469 = vst [vmem:[#allocation7 + $0x38] sm:$0xff] %v587_v24  ;;  %483 = vst [vmem:[#allocation7 + $0xa8] sm:$0xff] %v629_v25 }
 0x13b   :  { %v588_v26 = vpop.f32.mrb[16].mxu0  ;;  %v630_v27 = vpop.f32.mrb[16].mxu1 }
 0x13c   :  { %v589_v28 = vpop.f32.mrb[17].mxu0  ;;  %v631_v29 = vpop.f32.mrb[17].mxu1 }
 0x13d   :  { %v590_v30 = vadd.f32 %v589_v28, %v588_v26  ;;  %v591_v31 = vpop.f32.mrb[18].mxu0  ;;  %v632_v32 = vadd.f32 %v631_v29, %v630_v27  ;;  %v633_v33 = vpop.f32.mrb[18].mxu1 }
 0x13e   :  { %v592_v34 = vpop.f32.mrb[19].mxu0  ;;  %v634_v35 = vpop.f32.mrb[19].mxu1 }
 0x13f   :  { %470 = vst [vmem:[#allocation7 + $0x40] sm:$0xff] %v590_v30  ;;  %v593_v36 = vadd.f32 %v592_v34, %v591_v31  ;;  %484 = vst [vmem:[#allocation7 + $0xb0] sm:$0xff] %v632_v32  ;;  %v635_v37 = vadd.f32 %v634_v35, %v633_v33 }
 0x141   :  { %471 = vst [vmem:[#allocation7 + $0x48] sm:$0xff] %v593_v36  ;;  %485 = vst [vmem:[#allocation7 + $0xb8] sm:$0xff] %v635_v37 }
 0x143   :  { %v594_v38 = vpop.f32.mrb[20].mxu0  ;;  %v636_v39 = vpop.f32.mrb[20].mxu1 }
 0x144   :  { %v595_v40 = vpop.f32.mrb[21].mxu0  ;;  %v637_v41 = vpop.f32.mrb[21].mxu1 }
 0x145   :  { %v596_v42 = vadd.f32 %v595_v40, %v594_v38  ;;  %v597_v43 = vpop.f32.mrb[22].mxu0  ;;  %v638_v44 = vadd.f32 %v637_v41, %v636_v39  ;;  %v639_v45 = vpop.f32.mrb[22].mxu1 }
 0x146   :  { %v598_v46 = vpop.f32.mrb[23].mxu0  ;;  %v640_v47 = vpop.f32.mrb[23].mxu1 }
 0x147   :  { %472 = vst [vmem:[#allocation7 + $0x50] sm:$0xff] %v596_v42  ;;  %v599_v48 = vadd.f32 %v598_v46, %v597_v43  ;;  %486 = vst [vmem:[#allocation7 + $0xc0] sm:$0xff] %v638_v44  ;;  %v641_v49 = vadd.f32 %v640_v47, %v639_v45 }
 0x149   :  { %473 = vst [vmem:[#allocation7 + $0x58] sm:$0xff] %v599_v48  ;;  %487 = vst [vmem:[#allocation7 + $0xc8] sm:$0xff] %v641_v49 }
 0x14b   :  { %v600_v50 = vpop.f32.mrb[24].mxu0 }
 0x14c   :  { %v601_v51 = vpop.f32.mrb[25].mxu0 }
 0x14d   :  { %v602_v52 = vadd.f32 %v601_v51, %v600_v50  ;;  %v603_v53 = vpop.f32.mrb[26].mxu0 }
 0x14e   :  { %v604_v54 = vpop.f32.mrb[27].mxu0 }
 0x14f   :  { %474 = vst [vmem:[#allocation7 + $0x60] sm:$0xff] %v602_v52  ;;  %v605_v55 = vadd.f32 %v604_v54, %v603_v53 }
 0x151   :  { %475 = vst [vmem:[#allocation7 + $0x68] sm:$0xff] %v605_v55 }
 0x152   :  { %775 = shalt.err (!%p772_p6)
}
 0x153   :  { %s776_s12 = scalar_lea.hbm %s858_s2, 3328 }
 0x154   :  { %p777_p7 = scmp.ne.s32.totalorder %s858_s2, %s776_s12  ;;  %p780_p8 = scmp.lt.u32.totalorder %s776_s12, %s858_s2 }
 0x156   :  { %p782_p9 = pnand %p780_p8, %p777_p7 }
 0x158   :  { %785 = shalt.err (!%p782_p9)
}
 0x159   :  { %499 = dma.vmem_to_hbm [thread:$0]  %s494_s8, 3328, %s858_s2, [#allocation4], %s793_s19, %s793_s19, %s794_s20  }
 0x15a   :  { %790 = dma.done.wait [#allocation4], 3328  }
 0x15b   :  { %791 = vsyncadd [#allocation4], 4294963968 }
 0x15c   :  { %503 = vsyncpa [#allocation3], 1 }
 0x15d   :  { %504 = vsyncpa [#allocation6], 1 }
 0x15e   :  { %505 = vsyncpa [#allocation4], 1 }

</bundles_post_ra>
